<compile_context>
chip_gen: v5e
topology: v5e:2x2
jax: 0.10.0
libtpu: 0.0.40
codegen_flags: <defaults>
</compile_context>

<pallas_src>
import functools

import jax
import jax.numpy as jnp
from jax.experimental import pallas as pl
from jax.experimental.pallas import tpu as pltpu

_LANE = 128
_DEFAULT_BATCH_TILE = 4096   # step-overhead dominated => fat tiles; ~few MiB of VMEM


def _round_up(x, m):
    return ((x + m - 1) // m) * m


def _is_v7x():
    try:
        return "v7" in jax.devices()[0].device_kind.lower()
    except Exception:  # defensive: unknown backend -> generic path
        return False


# --------------------------------------------------------------------------------------
# Kernel
# --------------------------------------------------------------------------------------
def _critic_kernel(x_ref, w1_ref, b1_ref, w2_ref, b2_ref, w3_ref, b3_ref, o_ref,
                   *, value_head):
    """Fused 3-layer MLP on one batch tile, computed in transposed orientation so the
    batch sits on the 128-lane axis:

        h1^T  = relu(W1 . x^T  + b1)   (l0,  tile)  lane-dense
        h2^T  = relu(W2 . h1^T + b2)   (l1,  tile)  lane-dense
        out^T =      W3 . h2^T + b3    (out, tile)  lane-dense (unmasked vst)

    x arrives in its natural (tile, in_dim) layout; the first dot_general contracts x's
    feature axis directly (A.B^T form, same pattern as q.k^T in attention), so the
    relayout happens in-kernel on VMEM data -- no extra HBM pass in the wrapper.
    """
    wdt = w1_ref.dtype
    # Cast x in-kernel (hidden under MXU/DMA), never in the wrapper.
    x = x_ref[...].astype(wdt)                                        # (tile, in_dim)

    h1 = jax.lax.dot_general(w1_ref[...], x, (((1,), (1,)), ((), ())),
                             preferred_element_type=jnp.float32)       # (l0, tile)
    h1 = jnp.maximum(h1 + b1_ref[...], 0.0)

    h2 = jnp.dot(w2_ref[...], h1.astype(wdt),
                 preferred_element_type=jnp.float32)                   # (l1, tile)
    h2 = jnp.maximum(h2 + b2_ref[...], 0.0)

    if value_head:
        # output_dim == 1: VPU multiply + sublane (XLU) reduce instead of a
        # single-valid-row MXU matmul.  w3_ref is (l1, 1) f32.
        out = jnp.sum(h2 * w3_ref[...], axis=0, keepdims=True) + b3_ref[...]
    else:
        out = jnp.dot(w3_ref[...], h2.astype(wdt),
                      preferred_element_type=jnp.float32) + b3_ref[...]

    o_ref[...] = out.astype(o_ref.dtype)


# --------------------------------------------------------------------------------------
# Wrapper
# --------------------------------------------------------------------------------------
def critic_forward(x, params, *, batch_tile=None, compute_dtype=None):
    """Fused critic MLP as a single Pallas kernel, tiled over the batch axis.

    params = (w1, b1, w2, b2, w3, b3) in PyTorch nn.Linear layout:
    W has shape (out_features, in_features), b has shape (out_features,).
    """
    w1, b1, w2, b2, w3, b3 = params
    B, in_dim = x.shape
    l0 = w1.shape[0]
    l1 = w2.shape[0]
    out_dim = w3.shape[0]
    out_dtype = x.dtype
    assert w1.shape == (l0, in_dim) and w2.shape == (l1, l0) and w3.shape == (out_dim, l1)

    # Biases as f32 columns: broadcast over the lane (batch) axis inside the kernel,
    # and keep ReLU / adds on the f32 VPU path (safe on v5e too).
    b1c = jnp.asarray(b1, jnp.float32).reshape(l0, 1)
    b2c = jnp.asarray(b2, jnp.float32).reshape(l1, 1)
    b3c = jnp.asarray(b3, jnp.float32).reshape(out_dim, 1)

    value_head = (out_dim == 1)

    # Optional low-precision MXU path: pre-cast only the (tiny) weights; x is cast
    # in-kernel so its dominant HBM stream is read exactly once.
    if compute_dtype is not None:
        w1 = w1.astype(compute_dtype)
        w2 = w2.astype(compute_dtype)
        if not value_head:
            w3 = w3.astype(compute_dtype)
    # Value head keeps w3 in f32 as a (l1, 1) column for the VPU multiply + reduce.
    w3_arg = w3.reshape(l1, 1).astype(jnp.float32) if value_head else w3

    # ---- batch tiling --------------------------------------------------------------
    # Batch lives on the lane axis of every activation, so everything is rounded to 128
    # (also covers bf16 16-row sublane packing of the x tile).  Tiles are deliberately
    # fat: per-grid-step overhead (~0.35us) dwarfs the per-tile DMA/compute here, and
    # even an 8192-row tile is only a few MiB of VMEM on any generation (incl. v7x).
    b_pad = _round_up(max(B, 1), _LANE)
    if batch_tile is None:
        batch_tile = _DEFAULT_BATCH_TILE
    batch_tile = min(max(_LANE, _round_up(int(batch_tile), _LANE)), b_pad)
    n_steps = -(-b_pad // batch_tile)
    # Only v7x (2 TensorCores) benefits from forcing a multi-step "parallel" grid, and
    # only when each half still has >= ~1024 rows; on v5e/v6e the grid is a serial
    # loop, so take the fewest, fattest steps possible.
    if _is_v7x() and n_steps < 2 and b_pad >= 2048:
        n_steps = 2
    batch_tile = _round_up(-(-b_pad // n_steps), _LANE)   # balanced, lane-multiple tiles
    b_pad = _round_up(b_pad, batch_tile)
    grid = (b_pad // batch_tile,)

    if b_pad != B:
        x = jnp.pad(x, ((0, b_pad - B), (0, 0)))          # zero rows: relu(0*W+b) sliced off

    operands = (x, w1, b1c, w2, b2c, w3_arg, b3c)
    const = lambda shape: pl.BlockSpec(shape, lambda i: (0, 0))   # resident weights/biases

    flops = 2 * b_pad * (in_dim * l0 + l0 * l1 + l1 * out_dim)
    bytes_accessed = int(sum(int(a.size) * a.dtype.itemsize for a in operands)
                         + b_pad * out_dim * jnp.dtype(out_dtype).itemsize)
    cost = pl.CostEstimate(flops=flops, transcendentals=0, bytes_accessed=bytes_accessed)

    kernel = functools.partial(_critic_kernel, value_head=value_head)

    # Output is produced transposed, (out_dim, b_pad): each grid step writes a lane-dense
    # (out_dim, batch_tile) slab (unmasked stores) instead of a masked (batch_tile, 1)
    # column.  Transposing back in the wrapper is layout plumbing on B*out_dim elements.
    out_t = pl.pallas_call(
        kernel,
        out_shape=jax.ShapeDtypeStruct((out_dim, b_pad), out_dtype),
        grid_spec=pltpu.PrefetchScalarGridSpec(
            num_scalar_prefetch=0,
            grid=grid,
            in_specs=[
                pl.BlockSpec((batch_tile, in_dim), lambda i: (i, 0)),   # x tile
                const((l0, in_dim)),
                const((l0, 1)),
                const((l1, l0)),
                const((l1, 1)),
                const(w3_arg.shape),
                const((out_dim, 1)),
            ],
            out_specs=pl.BlockSpec((out_dim, batch_tile), lambda i: (0, i)),
        ),
        compiler_params=pltpu.CompilerParams(
            dimension_semantics=("parallel",),
        ),
        cost_estimate=cost,
    )(*operands)

    return out_t.T[:B]


# --------------------------------------------------------------------------------------
# Init + reference
# --------------------------------------------------------------------------------------
def init_critic_params(key, input_dim, output_dim, layers):
    """PyTorch nn.Linear-style init: W (out_features, in_features), b (out_features,),
    both U[-1/sqrt(fan_in), 1/sqrt(fan_in)]."""
    dims = [input_dim, layers[0], layers[1], output_dim]
    params = []
    for fan_in, fan_out in zip(dims[:-1], dims[1:]):
        key, kw, kb = jax.random.split(key, 3)
        bound = 1.0 / (fan_in ** 0.5)
        w = jax.random.uniform(kw, (fan_out, fan_in), jnp.float32, -bound, bound)
        b = jax.random.uniform(kb, (fan_out,), jnp.float32, -bound, bound)
        params.extend([w, b])
    return tuple(params)


def critic_reference(x, params):
    """Plain-JAX reference of the same forward pass (PyTorch weight layout)."""
    w1, b1, w2, b2, w3, b3 = params
    h = jnp.maximum(x @ w1.T + b1, 0.0)
    h = jnp.maximum(h @ w2.T + b2, 0.0)
    return h @ w3.T + b3


if __name__ == "__main__":
    key = jax.random.PRNGKey(0)

    input_dim = 16
    output_dim = 1
    layers = [32, 32]

    key, kp = jax.random.split(key)
    params = init_critic_params(kp, input_dim, output_dim, layers)

    # Case 1: tiny batch -> single fat grid step (no forced split on v5e/v6e).
    key, kx = jax.random.split(key)
    x_small = jax.random.normal(kx, (8, input_dim), jnp.float32)
    out_small = jax.block_until_ready(critic_forward(x_small, params))
    ref_small = critic_reference(x_small, params)
    assert out_small.shape == (8, output_dim), out_small.shape
    assert jnp.allclose(out_small, ref_small, atol=1e-4, rtol=1e-4), \
        float(jnp.max(jnp.abs(out_small - ref_small)))

    # Case 2: batch not a multiple of the tile -> padding + multi-step "parallel" grid.
    key, kx = jax.random.split(key)
    x_big = jax.random.normal(kx, (200, input_dim), jnp.float32)
    out_big = jax.block_until_ready(critic_forward(x_big, params, batch_tile=128))
    ref_big = critic_reference(x_big, params)
    assert out_big.shape == (200, output_dim), out_big.shape
    assert jnp.allclose(out_big, ref_big, atol=1e-4, rtol=1e-4), \
        float(jnp.max(jnp.abs(out_big - ref_big)))

    # Case 3: default fat tile + bf16 weights (x cast in-kernel), loose tolerance.
    out_bf16 = jax.block_until_ready(
        critic_forward(x_big, params, compute_dtype=jnp.bfloat16))
    assert out_bf16.shape == (200, output_dim), out_bf16.shape
    assert float(jnp.max(jnp.abs(out_bf16 - ref_big))) < 0.15, \
        float(jnp.max(jnp.abs(out_bf16 - ref_big)))

    print("KERNEL_OK")
</pallas_src>

<mosaic_0001>
module attributes {stable_mosaic.version = 11 : i64} {
  func.func @_critic_kernel(%arg0: i32, %arg1: memref<128x16xf32, #tpu.memory_space<vmem>>, %arg2: memref<32x16xf32, #tpu.memory_space<vmem>>, %arg3: memref<32x1xf32, #tpu.memory_space<vmem>>, %arg4: memref<32x32xf32, #tpu.memory_space<vmem>>, %arg5: memref<32x1xf32, #tpu.memory_space<vmem>>, %arg6: memref<32x1xf32, #tpu.memory_space<vmem>>, %arg7: memref<1x1xf32, #tpu.memory_space<vmem>>, %arg8: memref<1x128xf32, #tpu.memory_space<vmem>>) attributes {dimension_semantics = [#tpu.dimension_semantics<parallel>], iteration_bounds = array<i64: 1>, scalar_prefetch = 0 : i64, scratch_operands = 0 : i64, tpu.core_type = #tpu.core_type<tc>, window_params = [{transform_indices = @transform_0, window_bounds = array<i64: 128, 16>}, {pipeline_mode = #tpu.pipeline_mode<synchronous>, transform_indices = @transform_1, window_bounds = array<i64: 32, 16>}, {pipeline_mode = #tpu.pipeline_mode<synchronous>, transform_indices = @transform_2, window_bounds = array<i64: 32, 1>}, {pipeline_mode = #tpu.pipeline_mode<synchronous>, transform_indices = @transform_3, window_bounds = array<i64: 32, 32>}, {pipeline_mode = #tpu.pipeline_mode<synchronous>, transform_indices = @transform_4, window_bounds = array<i64: 32, 1>}, {pipeline_mode = #tpu.pipeline_mode<synchronous>, transform_indices = @transform_5, window_bounds = array<i64: 32, 1>}, {pipeline_mode = #tpu.pipeline_mode<synchronous>, transform_indices = @transform_6, window_bounds = array<i64: 1, 1>}, {transform_indices = @transform_7, window_bounds = array<i64: 1, 128>}]} {
    %c0 = arith.constant 0 : index
    %c0_0 = arith.constant 0 : index
    %0 = vector.load %arg1[%c0, %c0_0] : memref<128x16xf32, #tpu.memory_space<vmem>>, vector<128x16xf32>
    %c0_1 = arith.constant 0 : index
    %c0_2 = arith.constant 0 : index
    %1 = vector.load %arg2[%c0_1, %c0_2] : memref<32x16xf32, #tpu.memory_space<vmem>>, vector<32x16xf32>
    %cst = arith.constant dense<0.000000e+00> : vector<32x128xf32>
    %2 = tpu.matmul %1, %0, %cst {dimension_numbers = #tpu.dot_dimension_numbers<[1], [1], [0], [0], [0, 0, 1, 0], [], []>} : vector<32x16xf32>, vector<128x16xf32>, vector<32x128xf32> -> vector<32x128xf32>
    %c0_3 = arith.constant 0 : index
    %c0_4 = arith.constant 0 : index
    %3 = vector.load %arg3[%c0_3, %c0_4] : memref<32x1xf32, #tpu.memory_space<vmem>>, vector<32x1xf32>
    %4 = vector.broadcast %3 : vector<32x1xf32> to vector<32x128xf32>
    %5 = arith.addf %2, %4 : vector<32x128xf32>
    %cst_5 = arith.constant 0.000000e+00 : f32
    %6 = vector.broadcast %cst_5 : f32 to vector<32x128xf32>
    %7 = arith.maximumf %5, %6 : vector<32x128xf32>
    %c0_6 = arith.constant 0 : index
    %c0_7 = arith.constant 0 : index
    %8 = vector.load %arg4[%c0_6, %c0_7] : memref<32x32xf32, #tpu.memory_space<vmem>>, vector<32x32xf32>
    %cst_8 = arith.constant dense<0.000000e+00> : vector<32x128xf32>
    %9 = tpu.matmul %8, %7, %cst_8 {dimension_numbers = #tpu.dot_dimension_numbers<[1], [0], [0], [1], [0, 0, 1, 1], [], []>} : vector<32x32xf32>, vector<32x128xf32>, vector<32x128xf32> -> vector<32x128xf32>
    %c0_9 = arith.constant 0 : index
    %c0_10 = arith.constant 0 : index
    %10 = vector.load %arg5[%c0_9, %c0_10] : memref<32x1xf32, #tpu.memory_space<vmem>>, vector<32x1xf32>
    %11 = vector.broadcast %10 : vector<32x1xf32> to vector<32x128xf32>
    %12 = arith.addf %9, %11 : vector<32x128xf32>
    %cst_11 = arith.constant 0.000000e+00 : f32
    %13 = vector.broadcast %cst_11 : f32 to vector<32x128xf32>
    %14 = arith.maximumf %12, %13 : vector<32x128xf32>
    %c0_12 = arith.constant 0 : index
    %c0_13 = arith.constant 0 : index
    %15 = vector.load %arg6[%c0_12, %c0_13] : memref<32x1xf32, #tpu.memory_space<vmem>>, vector<32x1xf32>
    %16 = vector.broadcast %15 : vector<32x1xf32> to vector<32x128xf32>
    %17 = arith.mulf %14, %16 : vector<32x128xf32>
    %cst_14 = arith.constant dense<0.000000e+00> : vector<128xf32>
    %18 = vector.multi_reduction <add>, %17, %cst_14 [0] : vector<32x128xf32> to vector<128xf32>
    %19 = vector.shape_cast %18 : vector<128xf32> to vector<1x128xf32>
    %c0_15 = arith.constant 0 : index
    %c0_16 = arith.constant 0 : index
    %20 = vector.load %arg7[%c0_15, %c0_16] : memref<1x1xf32, #tpu.memory_space<vmem>>, vector<1x1xf32>
    %21 = vector.broadcast %20 : vector<1x1xf32> to vector<1x128xf32>
    %22 = arith.addf %19, %21 : vector<1x128xf32>
    %c0_17 = arith.constant 0 : index
    %c0_18 = arith.constant 0 : index
    %23 = vector.load %arg8[%c0_17, %c0_18] : memref<1x128xf32, #tpu.memory_space<vmem>>, vector<1x128xf32>
    tpu.vector_store %arg8[%c0_17, %c0_18], %22 {strides = array<i32>} : memref<1x128xf32, #tpu.memory_space<vmem>>, vector<1x128xf32>,
    return
  }
  func.func @transform_0(%arg0: i32) -> (i32, i32) {
    %c0_i32 = arith.constant 0 : i32
    %c0_i32_0 = arith.constant 0 : i32
    return %arg0, %c0_i32 : i32, i32
  }
  func.func @transform_1(%arg0: i32) -> (i32, i32) {
    %c0_i32 = arith.constant 0 : i32
    %c0_i32_0 = arith.constant 0 : i32
    %c0_i32_1 = arith.constant 0 : i32
    return %c0_i32, %c0_i32_0 : i32, i32
  }
  func.func @transform_2(%arg0: i32) -> (i32, i32) {
    %c0_i32 = arith.constant 0 : i32
    %c0_i32_0 = arith.constant 0 : i32
    %c0_i32_1 = arith.constant 0 : i32
    return %c0_i32, %c0_i32_0 : i32, i32
  }
  func.func @transform_3(%arg0: i32) -> (i32, i32) {
    %c0_i32 = arith.constant 0 : i32
    %c0_i32_0 = arith.constant 0 : i32
    %c0_i32_1 = arith.constant 0 : i32
    return %c0_i32, %c0_i32_0 : i32, i32
  }
  func.func @transform_4(%arg0: i32) -> (i32, i32) {
    %c0_i32 = arith.constant 0 : i32
    %c0_i32_0 = arith.constant 0 : i32
    %c0_i32_1 = arith.constant 0 : i32
    return %c0_i32, %c0_i32_0 : i32, i32
  }
  func.func @transform_5(%arg0: i32) -> (i32, i32) {
    %c0_i32 = arith.constant 0 : i32
    %c0_i32_0 = arith.constant 0 : i32
    %c0_i32_1 = arith.constant 0 : i32
    return %c0_i32, %c0_i32_0 : i32, i32
  }
  func.func @transform_6(%arg0: i32) -> (i32, i32) {
    %c0_i32 = arith.constant 0 : i32
    %c0_i32_0 = arith.constant 0 : i32
    %c0_i32_1 = arith.constant 0 : i32
    return %c0_i32, %c0_i32_0 : i32, i32
  }
  func.func @transform_7(%arg0: i32) -> (i32, i32) {
    %c0_i32 = arith.constant 0 : i32
    %c0_i32_0 = arith.constant 0 : i32
    return %c0_i32, %arg0 : i32, i32
  }
}

</mosaic_0001>

<bundles_post_ra>
// kernel: tpu_custom_call.1
= control target key start
LH: loop header
LB: loop body
LE: loop exit
PB: predicated region body
PF: predicated region fallthrough
CT: control target
= control target key end

     0   :  { %s598_s0 = inlined_call_operand.vmem [shape: f32[128,16], index: 0, kind: input, shape index: {}]   ;;  %s599_s1 = inlined_call_operand.vmem [shape: f32[32,16], index: 1, kind: input, shape index: {}]   ;;  %s600_s2 = inlined_call_operand.vmem [shape: f32[32,1], index: 2, kind: input, shape index: {}]   ;;  %s601_s3 = inlined_call_operand.vmem [shape: f32[32,32], index: 3, kind: input, shape index: {}]   ;;  %s602_s4 = inlined_call_operand.vmem [shape: f32[32,1], index: 4, kind: input, shape index: {}]   ;;  %s603_s5 = inlined_call_operand.vmem [shape: f32[32,1], index: 5, kind: input, shape index: {}]   ;;  %s604_s6 = inlined_call_operand.<no memory space> [shape: f32[1,1], index: 6, kind: input, shape index: {}]   ;;  %s605_s7 = inlined_call_operand.hbm [shape: f32[1,128], index: 7, kind: output, shape index: {}]  }
   0x1   :  { %v12_v0 = vstv %s604_s6 }
   0x2   :  { %13 = vst [vmem:[#allocation2] sm:$0x1] %v12_v0 }
   0x3   :  { %v44_v1 = vld [vmem:[%s598_s0 + $0x78] sm:$0xff]  ;;  %vm73_vm0 = vcmask 130048   ;;  %v43_v2 = vld [vmem:[%s598_s0 + $0x70] sm:$0xff] }
   0x4   :  { %328 = vmatpush.xpose.msk.msra.mxu3 %vm73_vm0, %v44_v1  ;;  %327 = vmatpush.xpose.msk.msra.mxu2 %vm73_vm0, %v44_v1 }
   0x5   :  { %303 = vmatpush.xpose.msk.msra.mxu0 %vm73_vm0, %v44_v1 }
   0x6   :  { %14 = vsyncpa [#allocation4], 0  ;;  %v42_v3 = vld [vmem:[%s598_s0 + $0x68] sm:$0xff]  ;;  %v41_v4 = vld [vmem:[%s598_s0 + $0x60] sm:$0xff]  ;;  %v390_v8 = vmov 0   ;;  %vm195_vm1 = vcmask 261120  }
   0x7   :  { %v40_v5 = vld [vmem:[%s598_s0 + $0x58] sm:$0xff]  ;;  %v39_v7 = vld [vmem:[%s598_s0 + $0x50] sm:$0xff]  ;;  %361 = vset.pattern.permute.xlu0 %v390_v8  ;;  %362 = vset.pattern.permute.xlu1 %v390_v8  ;;  %v38_v9 = vld [vmem:[%s598_s0 + $0x48] sm:$0xff]  ;;  %s294_s23 = sshll.u32 %s605_s7, 4  ;;  %s295_s23 = int_to_ptr.hbm [resolvable:$true] %s294_s23 }
   0x8   :  { %330 = vmatpush.xpose.msk.msra.mxu3 %vm73_vm0, %v43_v2  ;;  %329 = vmatpush.xpose.msk.msra.mxu2 %vm73_vm0, %v43_v2  ;;  %v52_v6 = vld [vmem:[%s600_s2 + $0x18] sm:$0xff]  ;;  %v51_v10 = vld [vmem:[%s600_s2 + $0x10] sm:$0xff]  ;;  %v37_v11 = vld [vmem:[%s598_s0 + $0x40] sm:$0xff] }
   0x9   :  { %304 = vmatpush.xpose.msk.msra.mxu0 %vm73_vm0, %v43_v2  ;;  %70 = vperm.xlu0 %361, %v52_v6   ;;  %v50_v12 = vld [vmem:[%s600_s2 + $0x8] sm:$0xff]  ;;  %v36_v13 = vld [vmem:[%s598_s0 + $0x38] sm:$0xff]  ;;  %v173_v14 = vld [vmem:[%s602_s4 + $0x10] sm:$0xff] }
   0xa   :  { %363 = vset.pattern.permute.xlu2 %v390_v8  ;;  %60 = vperm.xlu1 %362, %v50_v12   ;;  %v35_v15 = vld [vmem:[%s598_s0 + $0x30] sm:$0xff]  ;;  %v49_v16 = vld [vmem:[%s600_s2] sm:$0xff]  ;;  %v34_v17 = vld [vmem:[%s598_s0 + $0x28] sm:$0xff] }
   0xb   :  { %v242_v18 = vld [vmem:[%s603_s5 + $0x8] sm:$0xff]  ;;  %v33_v19 = vld [vmem:[%s598_s0 + $0x20] sm:$0xff]  ;;  %v174_v20 = vld [vmem:[%s602_s4 + $0x18] sm:$0xff] }
   0xc   :  { %332 = vmatpush.xpose.msk.msra.mxu3 %vm73_vm0, %v42_v3  ;;  %331 = vmatpush.xpose.msk.msra.mxu2 %vm73_vm0, %v42_v3  ;;  %v32_v21 = vld [vmem:[%s598_s0 + $0x18] sm:$0xff]  ;;  %v278_v22 = vld [vmem:[#allocation2] sm:$0x1]  ;;  %v31_v23 = vld [vmem:[%s598_s0 + $0x10] sm:$0xff] }
   0xd   :  { %305 = vmatpush.xpose.msk.msra.mxu0 %vm73_vm0, %v42_v3  ;;  %v243_v24 = vld [vmem:[%s603_s5 + $0x10] sm:$0xff]  ;;  %v30_v25 = vld [vmem:[%s598_s0 + $0x8] sm:$0xff]  ;;  %v29_v26 = vld [vmem:[%s598_s0] sm:$0xff] }
   0xe   :  { %v47_v27 = vld [vmem:[%s599_s1 + $0x10] sm:$0xff]  ;;  %v46_v28 = vld [vmem:[%s599_s1 + $0x8] sm:$0xff]  ;;  %v45_v29 = vld [vmem:[%s599_s1] sm:$0xff] }
   0xf   :  { %v48_v30 = vld [vmem:[%s599_s1 + $0x18] sm:$0xff]  ;;  %v171_v31 = vld [vmem:[%s602_s4] sm:$0xff]  ;;  %v172_v35 = vld [vmem:[%s602_s4 + $0x8] sm:$0xff] }
  0x10   :  { %334 = vmatpush.xpose.msk.msra.mxu3 %vm73_vm0, %v41_v4  ;;  %333 = vmatpush.xpose.msk.msra.mxu2 %vm73_vm0, %v41_v4  ;;  %v241_v45 = vld [vmem:[%s603_s5] sm:$0xff]  ;;  %v244_v51 = vld [vmem:[%s603_s5 + $0x18] sm:$0xff]  ;;  %v168_v52 = vld [vmem:[%s601_s3 + $0x8] sm:$0xff] }
  0x11   :  { %306 = vmatpush.xpose.msk.msra.mxu0 %vm73_vm0, %v41_v4  ;;  %65 = vperm.xlu0 %361, %v51_v10   ;;  %v167_v50 = vld [vmem:[%s601_s3] sm:$0xff]  ;;  %v169_v53 = vld [vmem:[%s601_s3 + $0x10] sm:$0xff]  ;;  %v170_v54 = vld [vmem:[%s601_s3 + $0x18] sm:$0xff]  ;;  %s391_s3 = smov [#allocation3]  }
  0x12   :  { %55 = vperm.xlu1 %362, %v49_v16   ;;  %177 = vperm.xlu2 %363, %v171_v31   ;;  %s292_s5 = sshll.u32 %s391_s3, 4  ;;  %s293_s5 = int_to_ptr.vmem [resolvable:$true] %s292_s5 }
  0x14   :  { %336 = vmatpush.xpose.msk.msra.mxu3 %vm73_vm0, %v40_v5  ;;  %335 = vmatpush.xpose.msk.msra.mxu2 %vm73_vm0, %v40_v5 }
  0x15   :  { %307 = vmatpush.xpose.msk.msra.mxu0 %vm73_vm0, %v40_v5 }
  0x18   :  { %338 = vmatpush.xpose.msk.msra.mxu3 %vm73_vm0, %v39_v7  ;;  %337 = vmatpush.xpose.msk.msra.mxu2 %vm73_vm0, %v39_v7 }
  0x19   :  { %308 = vmatpush.xpose.msk.msra.mxu0 %vm73_vm0, %v39_v7  ;;  %187 = vperm.xlu0 %361, %v173_v14  }
  0x1a   :  { %192 = vperm.xlu1 %362, %v174_v20   ;;  %182 = vperm.xlu2 %363, %v172_v35  }
  0x1c   :  { %340 = vmatpush.xpose.msk.msra.mxu3 %vm73_vm0, %v38_v9  ;;  %339 = vmatpush.xpose.msk.msra.mxu2 %vm73_vm0, %v38_v9 }
  0x1d   :  { %309 = vmatpush.xpose.msk.msra.mxu0 %vm73_vm0, %v38_v9 }
  0x20   :  { %342 = vmatpush.xpose.msk.msra.mxu3 %vm73_vm0, %v37_v11  ;;  %341 = vmatpush.xpose.msk.msra.mxu2 %vm73_vm0, %v37_v11 }
  0x21   :  { %310 = vmatpush.xpose.msk.msra.mxu0 %vm73_vm0, %v37_v11  ;;  %252 = vperm.xlu0 %361, %v242_v18  }
  0x22   :  { %257 = vperm.xlu1 %362, %v243_v24   ;;  %247 = vperm.xlu2 %363, %v241_v45  }
  0x24   :  { %344 = vmatpush.xpose.msk.msra.mxu3 %vm73_vm0, %v36_v13  ;;  %343 = vmatpush.xpose.msk.msra.mxu2 %vm73_vm0, %v36_v13 }
  0x25   :  { %311 = vmatpush.xpose.msk.msra.mxu0 %vm73_vm0, %v36_v13 }
  0x28   :  { %346 = vmatpush.xpose.msk.msra.mxu3 %vm73_vm0, %v35_v15  ;;  %345 = vmatpush.xpose.msk.msra.mxu2 %vm73_vm0, %v35_v15 }
  0x29   :  { %312 = vmatpush.xpose.msk.msra.mxu0 %vm73_vm0, %v35_v15  ;;  %281 = vperm.xlu0 %361, %v278_v22  }
  0x2a   :  { %262 = vperm.xlu2 %363, %v244_v51  }
  0x2c   :  { %348 = vmatpush.xpose.msk.msra.mxu3 %vm73_vm0, %v34_v17  ;;  %347 = vmatpush.xpose.msk.msra.mxu2 %vm73_vm0, %v34_v17 }
  0x2d   :  { %313 = vmatpush.xpose.msk.msra.mxu0 %vm73_vm0, %v34_v17 }
  0x30   :  { %350 = vmatpush.xpose.msk.msra.mxu3 %vm73_vm0, %v33_v19  ;;  %349 = vmatpush.xpose.msk.msra.mxu2 %vm73_vm0, %v33_v19 }
  0x31   :  { %314 = vmatpush.xpose.msk.msra.mxu0 %vm73_vm0, %v33_v19 }
  0x34   :  { %352 = vmatpush.xpose.msk.msra.mxu3 %vm73_vm0, %v32_v21  ;;  %351 = vmatpush.xpose.msk.msra.mxu2 %vm73_vm0, %v32_v21 }
  0x35   :  { %315 = vmatpush.xpose.msk.msra.mxu0 %vm73_vm0, %v32_v21 }
  0x38   :  { %354 = vmatpush.xpose.msk.msra.mxu3 %vm73_vm0, %v31_v23  ;;  %353 = vmatpush.xpose.msk.msra.mxu2 %vm73_vm0, %v31_v23 }
  0x39   :  { %316 = vmatpush.xpose.msk.msra.mxu0 %vm73_vm0, %v31_v23 }
  0x3c   :  { %356 = vmatpush.xpose.msk.msra.mxu3 %vm73_vm0, %v30_v25  ;;  %355 = vmatpush.xpose.msk.msra.mxu2 %vm73_vm0, %v30_v25 }
  0x3d   :  { %317 = vmatpush.xpose.msk.msra.mxu0 %vm73_vm0, %v30_v25 }
  0x40   :  { %358 = vmatpush.xpose.msk.msra.mxu3 %vm73_vm0, %v29_v26  ;;  %357 = vmatpush.xpose.msk.msra.mxu2 %vm73_vm0, %v29_v26 }
  0x41   :  { %318 = vmatpush.xpose.msk.msra.mxu0 %vm73_vm0, %v29_v26 }
  0x43   :  { %321 = vmatmul.msk.f32.vlgmr.msra.gmra.mxu3 %vm73_vm0, %v47_v27  ;;  %320 = vmatmul.msk.f32.vlgmr.msra.gmra.mxu2 %vm73_vm0, %v46_v28 }
  0x44   :  { %319 = vmatmul.msk.f32.vlgmr.msra.gmra.mxu0 %vm73_vm0, %v45_v29 }
  0x4b   :  { %322 = vmatmul.msk.f32.gmra.mxu3 %vm73_vm0, %v48_v30 }
  0x6c   :  { %v178_v55 = vpop.permute.xlu2 %177 }
  0x74   :  { %v183_v57 = vpop.permute.xlu2 %182 }
  0x7b   :  { %v71_v32 = vpop.permute.xlu0 %70 }
  0x7c   :  { %v61_v34 = vpop.permute.xlu1 %60  ;;  %v248_v1 = vpop.permute.xlu2 %247 }
  0x83   :  { %v66_v36 = vpop.permute.xlu0 %65 }
  0x84   :  { %v56_v44 = vpop.permute.xlu1 %55  ;;  %v263_v14 = vpop.permute.xlu2 %262 }
  0x8b   :  { %v188_v59 = vpop.permute.xlu0 %187 }
  0x8c   :  { %v193_v60 = vpop.permute.xlu1 %192 }
  0x93   :  { %v253_v5 = vpop.permute.xlu0 %252 }
  0x94   :  { %v258_v7 = vpop.permute.xlu1 %257 }
  0x9b   :  { %v282_v22 = vpop.permute.xlu0 %281 }
  0x9c   :  { %v284_v24 = vperm.slane %v282_v22, 0 }
  0xc1   :  { %v151_v41 = vpop.f32.mrf.mxu0 }
  0xc2   :  { %v152_v47 = vadd.f32 %v151_v41, %v56_v44 }
  0xc4   :  { %v163_v49 = vmax.f32 %v152_v47, 0.0 }
  0xc6   :  { %v157_v33 = vpop.f32.mrf.mxu3  ;;  %v154_v37 = vpop.f32.mrf.mxu2 }
  0xc7   :  { %v158_v39 = vadd.f32 %v157_v33, %v66_v36  ;;  %v155_v42 = vadd.f32 %v154_v37, %v61_v34 }
  0xc9   :  { %v165_v46 = vmax.f32 %v158_v39, 0.0  ;;  %v164_v48 = vmax.f32 %v155_v42, 0.0 }
  0xce   :  { %v160_v38 = vpop.f32.mrf.mxu3 }
  0xcf   :  { %v161_v40 = vadd.f32 %v160_v38, %v71_v32 }
  0xd1   :  { %v166_v43 = vmax.f32 %v161_v40, 0.0 }
  0xd3   :  { %220 = vmatpush.msra.mxu1 %v166_v43 }
  0xd5   :  { %221 = vmatpush.msra.mxu1 %v165_v46 }
  0xd7   :  { %222 = vmatpush.msra.mxu1 %v164_v48 }
  0xd9   :  { %223 = vmatpush.msra.mxu1 %v163_v49 }
  0xda   :  { %323 = vmatmul.msk.f32.vlgmr.msra.gmra.mxu1 %vm195_vm1, %v167_v50 }
  0xe2   :  { %324 = vmatmul.msk.f32.gmra.mxu1 %vm195_vm1, %v168_v52 }
  0xea   :  { %325 = vmatmul.msk.f32.gmra.mxu1 %vm195_vm1, %v169_v53 }
  0xf2   :  { %326 = vmatmul.msk.f32.gmra.mxu1 %vm195_vm1, %v170_v54 }
 0x157   :  { %v225_v56 = vpop.f32.mrf.mxu1 }
 0x158   :  { %v226_v63 = vadd.f32 %v225_v56, %v178_v55 }
 0x15a   :  { %v237_v3 = vmax.f32 %v226_v63, 0.0 }
 0x15c   :  { %v265_v9 = vmul.f32 %v248_v1, %v237_v3 }
 0x15f   :  { %v228_v58 = vpop.f32.mrf.mxu1 }
 0x160   :  { %v229_v61 = vadd.f32 %v228_v58, %v183_v57 }
 0x162   :  { %v238_v2 = vmax.f32 %v229_v61, 0.0 }
 0x164   :  { %v266_v6 = vmul.f32 %v253_v5, %v238_v2 }
 0x166   :  { %v269_v12 = vadd.f32 %v266_v6, %v265_v9 }
 0x167   :  { %v231_v62 = vpop.f32.mrf.mxu1 }
 0x168   :  { %v232_v0 = vadd.f32 %v231_v62, %v188_v59 }
 0x16a   :  { %v239_v4 = vmax.f32 %v232_v0, 0.0 }
 0x16c   :  { %v267_v10 = vmul.f32 %v258_v7, %v239_v4 }
 0x16e   :  { %v270_v15 = vadd.f32 %v269_v12, %v267_v10 }
 0x16f   :  { %v234_v8 = vpop.f32.mrf.mxu1 }
 0x170   :  { %v235_v11 = vadd.f32 %v234_v8, %v193_v60 }
 0x172   :  { %v240_v13 = vmax.f32 %v235_v11, 0.0 }
 0x174   :  { %v268_v16 = vmul.f32 %v263_v14, %v240_v13 }
 0x176   :  { %v271_v17 = vadd.f32 %v270_v15, %v268_v16 }
 0x178   :  { %v272_v18 = vrot.slane %v271_v17, 4 }
 0x17a   :  { %v273_v19 = vadd.f32 %v272_v18, %v271_v17 }
 0x17c   :  { %v274_v20 = vrot.slane %v273_v19, 2 }
 0x17e   :  { %v275_v21 = vadd.f32 %v274_v20, %v273_v19 }
 0x180   :  { %v276_v23 = vrot.slane %v275_v21, 1 }
 0x182   :  { %v277_v25 = vadd.f32 %v276_v23, %v275_v21 }
 0x184   :  { %v285_v26 = vadd.f32 %v284_v24, %v277_v25 }
 0x186   :  { %286 = vst [vmem:[#allocation3] sm:$0x1] %v285_v26 }
 0x187   :  { %297 = dma.vmem_to_hbm [thread:$0]  %s293_s5, 16, %s295_s23, [#allocation4]  }
 0x188   :  { %388 = dma.done.wait [#allocation4], 16  }
 0x189   :  { %389 = vsyncadd [#allocation4], 4294967280 }
 0x18a   :  { %302 = vsyncpa [#allocation4], 1 }

</bundles_post_ra>
